<compile_context>
chip_gen: v7x
topology: tpu7x:2x2x1
jax: 0.10.0
libtpu: 0.0.40
codegen_flags: <defaults>
</compile_context>

<pallas_src>
import functools
import math

import jax
import jax.numpy as jnp
from jax import lax
from jax.experimental import pallas as pl
from jax.experimental.pallas import tpu as pltpu

_HALF_LOG_2PI = 0.9189385332046727  # 0.5 * log(2*pi)


def _stable_softplus(x):
    # softplus(x) = log(1 + exp(x)), computed without overflow/underflow.
    return jnp.maximum(x, 0.0) + jnp.log1p(jnp.exp(-jnp.abs(x)))


def _normal_logprob(v, mu, sigma):
    # torch.distributions.Normal(mu, sigma).log_prob(v)  (reference-form, used for checking)
    return -jnp.log(sigma) - _HALF_LOG_2PI - (v - mu) ** 2 / (2.0 * sigma * sigma)


def _linear_bbb_kernel(x_ref, w_mu_ref, w_rho_ref, w_eps_ref,
                       b_mu_ref, b_rho_ref, b_eps_ref,
                       y_ref, log_prior_ref, log_post_ref,
                       *, prior_mean, inv_two_var, prior_const, post_const):
    w_mu = w_mu_ref[...]
    w_rho = w_rho_ref[...]
    w_eps = w_eps_ref[...]
    w_sigma = _stable_softplus(w_rho)
    w = w_mu + w_sigma * w_eps                  # reparameterized weight sample

    b_mu = b_mu_ref[...]
    b_rho = b_rho_ref[...]
    b_eps = b_eps_ref[...]
    b_sigma = _stable_softplus(b_rho)
    b = b_mu + b_sigma * b_eps                  # reparameterized bias sample

    # --- log prior: Normal(prior_mean, prior_std) over sampled w and b -----------------
    # log_prior = -N*(log(prior_std) + 0.5*log(2pi)) - sum((v - prior_mean)^2) / (2*prior_std^2)
    sq_dev = (jnp.sum((w - prior_mean) ** 2) + jnp.sum((b - prior_mean) ** 2))
    log_prior_ref[0, 0] = prior_const - sq_dev * inv_two_var

    # --- log variational posterior: Normal(mu, sigma) evaluated at samples -------------
    # (v - mu) = sigma * eps  =>  quadratic term is eps^2 / 2; no divide needed.
    log_sigma_sum = jnp.sum(jnp.log(w_sigma)) + jnp.sum(jnp.log(b_sigma))
    eps_sq_sum = jnp.sum(w_eps * w_eps) + jnp.sum(b_eps * b_eps)
    log_post_ref[0, 0] = post_const - log_sigma_sum - 0.5 * eps_sq_sum

    # --- F.linear(x, w, b) = x @ w.T + b  (contract dim 1 of both operands; no w.T) -----
    y = lax.dot_general(x_ref[...], w,
                        dimension_numbers=(((1,), (1,)), ((), ())),
                        preferred_element_type=jnp.float32)
    y_ref[...] = (y + b).astype(y_ref.dtype)


def linear_bbb_forward(x, w_mu, w_rho, w_eps, b_mu, b_rho, b_eps,
                       prior_mean=2.0, prior_std=1.0):
    """Runs the fused Linear_BBB forward. Returns (y, log_prior, log_post)."""
    batch, in_features = x.shape
    out_features = w_mu.shape[0]

    # biases go in as (1, out_features) 2-D slabs for TPU-friendly layout
    b_mu2 = b_mu.reshape(1, out_features)
    b_rho2 = b_rho.reshape(1, out_features)
    b_eps2 = b_eps.reshape(1, out_features)

    n_params = float(out_features * in_features + out_features)
    prior_std = float(prior_std)
    prior_mean = float(prior_mean)
    inv_two_var = 1.0 / (2.0 * prior_std * prior_std)
    prior_const = -n_params * (math.log(prior_std) + _HALF_LOG_2PI)
    post_const = -n_params * _HALF_LOG_2PI

    vmem_spec = pl.BlockSpec(memory_space=pltpu.MemorySpace.VMEM)
    smem_spec = pl.BlockSpec(memory_space=pltpu.MemorySpace.SMEM)

    y, log_prior, log_post = pl.pallas_call(
        functools.partial(_linear_bbb_kernel,
                          prior_mean=prior_mean,
                          inv_two_var=inv_two_var,
                          prior_const=prior_const,
                          post_const=post_const),
        out_shape=(
            jax.ShapeDtypeStruct((batch, out_features), jnp.float32),
            jax.ShapeDtypeStruct((1, 1), jnp.float32),
            jax.ShapeDtypeStruct((1, 1), jnp.float32),
        ),
        in_specs=[vmem_spec] * 7,
        out_specs=(vmem_spec, smem_spec, smem_spec),
    )(x, w_mu, w_rho, w_eps, b_mu2, b_rho2, b_eps2)

    return y, log_prior[0, 0], log_post[0, 0]


if __name__ == "__main__":
    # Module BNN_60_48_32 first layer: Linear_BBB(60, 48); use a small batch.
    batch, in_features, out_features = 4, 60, 48
    prior_mean, prior_std = 2.0, 1.0   # Normal(2, prior_var) with prior_var=1.0

    key = jax.random.PRNGKey(0)
    k_x, k_wm, k_wr, k_bm, k_br, k_we, k_be = jax.random.split(key, 7)

    # Small deterministic parameter values (the torch __init__ uses zeros; random
    # values exercise the log-prob / sampling math more thoroughly).
    w_mu = 0.1 * jax.random.normal(k_wm, (out_features, in_features), jnp.float32)
    w_rho = -1.0 + 0.1 * jax.random.normal(k_wr, (out_features, in_features), jnp.float32)
    b_mu = 0.1 * jax.random.normal(k_bm, (out_features,), jnp.float32)
    b_rho = -1.0 + 0.1 * jax.random.normal(k_br, (out_features,), jnp.float32)

    # Normal(0,1) epsilon samples (the stochastic part of the forward pass).
    w_eps = jax.random.normal(k_we, (out_features, in_features), jnp.float32)
    b_eps = jax.random.normal(k_be, (out_features,), jnp.float32)

    x = jax.random.normal(k_x, (batch, in_features), jnp.float32)

    y, log_prior, log_post = linear_bbb_forward(
        x, w_mu, w_rho, w_eps, b_mu, b_rho, b_eps,
        prior_mean=prior_mean, prior_std=prior_std)
    jax.block_until_ready((y, log_prior, log_post))

    # Pure-JAX reference check (naive torch-style formulas).
    w_sigma = jnp.log1p(jnp.exp(w_rho))
    b_sigma = jnp.log1p(jnp.exp(b_rho))
    w = w_mu + w_sigma * w_eps
    b = b_mu + b_sigma * b_eps
    y_ref = x @ w.T + b
    lp_ref = (jnp.sum(_normal_logprob(w, prior_mean, prior_std))
              + jnp.sum(_normal_logprob(b, prior_mean, prior_std)))
    lq_ref = (jnp.sum(_normal_logprob(w, w_mu, w_sigma))
              + jnp.sum(_normal_logprob(b, b_mu, b_sigma)))

    assert jnp.allclose(y, y_ref, atol=1e-5, rtol=1e-5), "y mismatch"
    assert jnp.allclose(log_prior, lp_ref, atol=5e-3, rtol=1e-5), "log_prior mismatch"
    assert jnp.allclose(log_post, lq_ref, atol=5e-3, rtol=1e-5), "log_post mismatch"

    print("KERNEL_OK")
</pallas_src>

<mosaic_0001>
module attributes {stable_mosaic.version = 11 : i64} {
  func.func @_linear_bbb_kernel(%arg0: memref<4x60xf32, #tpu.memory_space<vmem>>, %arg1: memref<48x60xf32, #tpu.memory_space<vmem>>, %arg2: memref<48x60xf32, #tpu.memory_space<vmem>>, %arg3: memref<48x60xf32, #tpu.memory_space<vmem>>, %arg4: memref<1x48xf32, #tpu.memory_space<vmem>>, %arg5: memref<1x48xf32, #tpu.memory_space<vmem>>, %arg6: memref<1x48xf32, #tpu.memory_space<vmem>>, %arg7: memref<4x48xf32, #tpu.memory_space<vmem>>, %arg8: memref<1x1xf32, #tpu.memory_space<smem>>, %arg9: memref<1x1xf32, #tpu.memory_space<smem>>) attributes {dimension_semantics = [], scalar_prefetch = 0 : i64, scratch_operands = 0 : i64, tpu.core_type = #tpu.core_type<tc>} {
    %c0 = arith.constant 0 : index
    %c0_0 = arith.constant 0 : index
    %0 = vector.load %arg1[%c0, %c0_0] : memref<48x60xf32, #tpu.memory_space<vmem>>, vector<48x60xf32>
    %c0_1 = arith.constant 0 : index
    %c0_2 = arith.constant 0 : index
    %1 = vector.load %arg2[%c0_1, %c0_2] : memref<48x60xf32, #tpu.memory_space<vmem>>, vector<48x60xf32>
    %c0_3 = arith.constant 0 : index
    %c0_4 = arith.constant 0 : index
    %2 = vector.load %arg3[%c0_3, %c0_4] : memref<48x60xf32, #tpu.memory_space<vmem>>, vector<48x60xf32>
    %cst = arith.constant 0.000000e+00 : f32
    %3 = vector.broadcast %cst : f32 to vector<48x60xf32>
    %4 = arith.maximumf %1, %3 : vector<48x60xf32>
    %5 = math.absf %1 : vector<48x60xf32>
    %cst_5 = arith.constant 0.000000e+00 : f32
    %6 = vector.broadcast %cst_5 : f32 to vector<48x60xf32>
    %7 = arith.subf %6, %5 : vector<48x60xf32>
    %8 = math.exp %7 : vector<48x60xf32>
    %9 = math.log1p %8 : vector<48x60xf32>
    %10 = arith.addf %4, %9 : vector<48x60xf32>
    %11 = arith.mulf %10, %2 : vector<48x60xf32>
    %12 = arith.addf %0, %11 : vector<48x60xf32>
    %c0_6 = arith.constant 0 : index
    %c0_7 = arith.constant 0 : index
    %13 = vector.load %arg4[%c0_6, %c0_7] : memref<1x48xf32, #tpu.memory_space<vmem>>, vector<1x48xf32>
    %c0_8 = arith.constant 0 : index
    %c0_9 = arith.constant 0 : index
    %14 = vector.load %arg5[%c0_8, %c0_9] : memref<1x48xf32, #tpu.memory_space<vmem>>, vector<1x48xf32>
    %c0_10 = arith.constant 0 : index
    %c0_11 = arith.constant 0 : index
    %15 = vector.load %arg6[%c0_10, %c0_11] : memref<1x48xf32, #tpu.memory_space<vmem>>, vector<1x48xf32>
    %cst_12 = arith.constant 0.000000e+00 : f32
    %16 = vector.broadcast %cst_12 : f32 to vector<1x48xf32>
    %17 = arith.maximumf %14, %16 : vector<1x48xf32>
    %18 = math.absf %14 : vector<1x48xf32>
    %cst_13 = arith.constant 0.000000e+00 : f32
    %19 = vector.broadcast %cst_13 : f32 to vector<1x48xf32>
    %20 = arith.subf %19, %18 : vector<1x48xf32>
    %21 = math.exp %20 : vector<1x48xf32>
    %22 = math.log1p %21 : vector<1x48xf32>
    %23 = arith.addf %17, %22 : vector<1x48xf32>
    %24 = arith.mulf %23, %15 : vector<1x48xf32>
    %25 = arith.addf %13, %24 : vector<1x48xf32>
    %cst_14 = arith.constant 2.000000e+00 : f32
    %26 = vector.broadcast %cst_14 : f32 to vector<48x60xf32>
    %27 = arith.subf %12, %26 : vector<48x60xf32>
    %28 = arith.mulf %27, %27 : vector<48x60xf32>
    %29 = vector.shape_cast %28 : vector<48x60xf32> to vector<1x48x60xf32>
    %cst_15 = arith.constant dense<0.000000e+00> : vector<1xf32>
    %30 = vector.multi_reduction <add>, %29, %cst_15 [1, 2] : vector<1x48x60xf32> to vector<1xf32>
    %31 = vector.shape_cast %30 : vector<1xf32> to vector<1x1x1xf32>
    %32 = vector.extract %31[0, 0, 0] : f32 from vector<1x1x1xf32>
    %cst_16 = arith.constant 2.000000e+00 : f32
    %33 = vector.broadcast %cst_16 : f32 to vector<1x48xf32>
    %34 = arith.subf %25, %33 : vector<1x48xf32>
    %35 = arith.mulf %34, %34 : vector<1x48xf32>
    %36 = vector.shape_cast %35 : vector<1x48xf32> to vector<1x1x48xf32>
    %cst_17 = arith.constant dense<0.000000e+00> : vector<1xf32>
    %37 = vector.multi_reduction <add>, %36, %cst_17 [1, 2] : vector<1x1x48xf32> to vector<1xf32>
    %38 = vector.shape_cast %37 : vector<1xf32> to vector<1x1x1xf32>
    %39 = vector.extract %38[0, 0, 0] : f32 from vector<1x1x1xf32>
    %40 = arith.addf %32, %39 : f32
    %cst_18 = arith.constant 5.000000e-01 : f32
    %41 = arith.mulf %40, %cst_18 : f32
    %cst_19 = arith.constant -2690.6521 : f32
    %42 = arith.subf %cst_19, %41 : f32
    %c0_20 = arith.constant 0 : index
    %c0_21 = arith.constant 0 : index
    %43 = memref.load %arg8[%c0_20, %c0_21] : memref<1x1xf32, #tpu.memory_space<smem>>
    memref.store %42, %arg8[%c0_20, %c0_21] : memref<1x1xf32, #tpu.memory_space<smem>>
    %44 = math.log %10 : vector<48x60xf32>
    %45 = vector.shape_cast %44 : vector<48x60xf32> to vector<1x48x60xf32>
    %cst_22 = arith.constant dense<0.000000e+00> : vector<1xf32>
    %46 = vector.multi_reduction <add>, %45, %cst_22 [1, 2] : vector<1x48x60xf32> to vector<1xf32>
    %47 = vector.shape_cast %46 : vector<1xf32> to vector<1x1x1xf32>
    %48 = vector.extract %47[0, 0, 0] : f32 from vector<1x1x1xf32>
    %49 = math.log %23 : vector<1x48xf32>
    %50 = vector.shape_cast %49 : vector<1x48xf32> to vector<1x1x48xf32>
    %cst_23 = arith.constant dense<0.000000e+00> : vector<1xf32>
    %51 = vector.multi_reduction <add>, %50, %cst_23 [1, 2] : vector<1x1x48xf32> to vector<1xf32>
    %52 = vector.shape_cast %51 : vector<1xf32> to vector<1x1x1xf32>
    %53 = vector.extract %52[0, 0, 0] : f32 from vector<1x1x1xf32>
    %54 = arith.addf %48, %53 : f32
    %55 = arith.mulf %2, %2 : vector<48x60xf32>
    %56 = vector.shape_cast %55 : vector<48x60xf32> to vector<1x48x60xf32>
    %cst_24 = arith.constant dense<0.000000e+00> : vector<1xf32>
    %57 = vector.multi_reduction <add>, %56, %cst_24 [1, 2] : vector<1x48x60xf32> to vector<1xf32>
    %58 = vector.shape_cast %57 : vector<1xf32> to vector<1x1x1xf32>
    %59 = vector.extract %58[0, 0, 0] : f32 from vector<1x1x1xf32>
    %60 = arith.mulf %15, %15 : vector<1x48xf32>
    %61 = vector.shape_cast %60 : vector<1x48xf32> to vector<1x1x48xf32>
    %cst_25 = arith.constant dense<0.000000e+00> : vector<1xf32>
    %62 = vector.multi_reduction <add>, %61, %cst_25 [1, 2] : vector<1x1x48xf32> to vector<1xf32>
    %63 = vector.shape_cast %62 : vector<1xf32> to vector<1x1x1xf32>
    %64 = vector.extract %63[0, 0, 0] : f32 from vector<1x1x1xf32>
    %65 = arith.addf %59, %64 : f32
    %cst_26 = arith.constant -2690.6521 : f32
    %66 = arith.subf %cst_26, %54 : f32
    %cst_27 = arith.constant 5.000000e-01 : f32
    %67 = arith.mulf %cst_27, %65 : f32
    %68 = arith.subf %66, %67 : f32
    %c0_28 = arith.constant 0 : index
    %c0_29 = arith.constant 0 : index
    %69 = memref.load %arg9[%c0_28, %c0_29] : memref<1x1xf32, #tpu.memory_space<smem>>
    memref.store %68, %arg9[%c0_28, %c0_29] : memref<1x1xf32, #tpu.memory_space<smem>>
    %c0_30 = arith.constant 0 : index
    %c0_31 = arith.constant 0 : index
    %70 = vector.load %arg0[%c0_30, %c0_31] : memref<4x60xf32, #tpu.memory_space<vmem>>, vector<4x60xf32>
    %cst_32 = arith.constant dense<0.000000e+00> : vector<4x48xf32>
    %71 = tpu.matmul %70, %12, %cst_32 {dimension_numbers = #tpu.dot_dimension_numbers<[1], [1], [0], [0], [0, 0, 1, 0], [], []>} : vector<4x60xf32>, vector<48x60xf32>, vector<4x48xf32> -> vector<4x48xf32>
    %72 = vector.broadcast %25 : vector<1x48xf32> to vector<4x48xf32>
    %73 = arith.addf %71, %72 : vector<4x48xf32>
    %c0_33 = arith.constant 0 : index
    %c0_34 = arith.constant 0 : index
    %74 = vector.load %arg7[%c0_33, %c0_34] : memref<4x48xf32, #tpu.memory_space<vmem>>, vector<4x48xf32>
    tpu.vector_store %arg7[%c0_33, %c0_34], %73 {strides = array<i32>} : memref<4x48xf32, #tpu.memory_space<vmem>>, vector<4x48xf32>,
    return
  }
}

</mosaic_0001>

<bundles_post_ra>
// kernel: tpu_custom_call.1
= control target key start
LH: loop header
LB: loop body
LE: loop exit
PB: predicated region body
PF: predicated region fallthrough
CT: control target
= control target key end

     0   :  { %15 = vsyncpa [#allocation3], 0  ;;  %s1095_s0 = inlined_call_operand.hbm [shape: f32[4,60], index: 0, kind: input, shape index: {}]   ;;  %s1096_s1 = inlined_call_operand.hbm [shape: f32[48,60], index: 1, kind: input, shape index: {}]   ;;  %s1097_s2 = inlined_call_operand.hbm [shape: f32[48,60], index: 2, kind: input, shape index: {}]   ;;  %s1098_s3 = inlined_call_operand.hbm [shape: f32[48,60], index: 3, kind: input, shape index: {}]   ;;  %s1099_s4 = inlined_call_operand.vmem [shape: f32[1,48], index: 4, kind: input, shape index: {}]   ;;  %s1100_s5 = inlined_call_operand.vmem [shape: f32[1,48], index: 5, kind: input, shape index: {}]   ;;  %s1101_s6 = inlined_call_operand.vmem [shape: f32[1,48], index: 6, kind: input, shape index: {}]   ;;  %s1102_s7 = inlined_call_operand.hbm [shape: f32[4,48], index: 7, kind: output, shape index: {0}]   ;;  %s1103_s8 = inlined_call_operand.hbm [shape: f32[1,1], index: 8, kind: output, shape index: {1}]   ;;  %s1104_s9 = inlined_call_operand.hbm [shape: f32[1,1], index: 9, kind: output, shape index: {2}]  }
   0x1   :  { %16 = vsyncpa [#allocation7], 0 }
   0x2   :  { %17 = vsyncpa [#allocation10], 0 }
   0x3   :  { %18 = vsyncpa [#allocation4], 0 }
   0x4   :  { %19 = vsyncpa [#allocation5], 0 }
   0x5   :  { %20 = vsyncpa [#allocation14], 0  ;;  %s762_s30 = smov [#allocation6]   ;;  %s620_s13 = scalar_lea.hbm %s1096_s1, 768 }
   0x6   :  { %s36_s10 = sshll.u32 %s762_s30, 4  ;;  %p621_p0 = scmp.ne.s32.totalorder %s1096_s1, %s620_s13  ;;  %s37_s10 = int_to_ptr.vmem [resolvable:$true] %s36_s10 }
   0x7   :  { %p624_p1 = scmp.lt.u32.totalorder %s620_s13, %s1096_s1 }
   0x9   :  { %p626_p2 = pnand %p624_p1, %p621_p0 }
   0xb   :  { %629 = shalt.err (!%p626_p2)
}
   0xc   :  { %s630_s18 = scalar_lea.vmem %s37_s10, 768  ;;  %p635_p4 = scmp.lt.s32.totalorder %s37_s10, %s37_s10 }
   0xd   :  { %p631_p3 = scmp.ne.s32.totalorder %s37_s10, %s630_s18  ;;  %p636_p5 = scmp.lt.s32.totalorder %s630_s18, %s630_s18 }
   0xf   :  { %p637_p6 = por %p636_p5, %p635_p4 }
  0x11   :  { %p638_p7 = pnand %p637_p6, %p631_p3 }
  0x13   :  { %641 = shalt.err (!%p638_p7)
}
  0x14   :  { %s763_s19 = smov 128   ;;  %s764_s20 = smov 8  }
  0x15   :  { %42 = dma.hbm_to_vmem [thread:$0]  %s1096_s1, 768, %s37_s10, [#allocation7], %s763_s19, %s763_s19, %s764_s20  }
  0x16   :  { %s765_s23 = smov [#allocation2]   ;;  %s766_s25 = smov [#allocation8]  }
  0x17   :  { %s27_s24 = sshll.u32 %s765_s23, 4  ;;  %s48_s26 = sshll.u32 %s766_s25, 4  ;;  %s28_s24 = int_to_ptr.vmem [resolvable:$true] %s27_s24  ;;  %s49_s26 = int_to_ptr.vmem [resolvable:$true] %s48_s26 }
  0x18   :  { %s642_s29 = scalar_lea.hbm %s1095_s0, 64 }
  0x19   :  { %p643_p8 = scmp.ne.s32.totalorder %s1095_s0, %s642_s29  ;;  %p646_p9 = scmp.lt.u32.totalorder %s642_s29, %s1095_s0 }
  0x1b   :  { %p648_p10 = pnand %p646_p9, %p643_p8 }
  0x1d   :  { %651 = shalt.err (!%p648_p10)
}
  0x1e   :  { %s652_s1 = scalar_lea.vmem %s28_s24, 64  ;;  %p657_p12 = scmp.lt.s32.totalorder %s28_s24, %s28_s24 }
  0x1f   :  { %p653_p11 = scmp.ne.s32.totalorder %s28_s24, %s652_s1  ;;  %p658_p13 = scmp.lt.s32.totalorder %s652_s1, %s652_s1 }
  0x21   :  { %p659_p0 = por %p658_p13, %p657_p12 }
  0x23   :  { %p660_p1 = pnand %p659_p0, %p653_p11 }
  0x25   :  { %663 = shalt.err (!%p660_p1)
}
  0x26   :  { %30 = dma.hbm_to_vmem [thread:$0]  %s1095_s0, 64, %s28_s24, [#allocation3]  }
  0x27   :  { %s664_s17 = scalar_lea.hbm %s1097_s2, 768 }
  0x28   :  { %p665_p2 = scmp.ne.s32.totalorder %s1097_s2, %s664_s17  ;;  %p668_p3 = scmp.lt.u32.totalorder %s664_s17, %s1097_s2 }
  0x2a   :  { %p670_p4 = pnand %p668_p3, %p665_p2 }
  0x2c   :  { %673 = shalt.err (!%p670_p4)
}
  0x2d   :  { %s674_s25 = scalar_lea.vmem %s49_s26, 768  ;;  %p679_p6 = scmp.lt.s32.totalorder %s49_s26, %s49_s26 }
  0x2e   :  { %p675_p5 = scmp.ne.s32.totalorder %s49_s26, %s674_s25  ;;  %p680_p7 = scmp.lt.s32.totalorder %s674_s25, %s674_s25 }
  0x30   :  { %p681_p8 = por %p680_p7, %p679_p6 }
  0x32   :  { %p682_p9 = pnand %p681_p8, %p675_p5 }
  0x34   :  { %685 = shalt.err (!%p682_p9)
}
  0x35   :  { %54 = dma.hbm_to_vmem [thread:$0]  %s1097_s2, 768, %s49_s26, [#allocation7], %s763_s19, %s763_s19, %s764_s20  }
  0x36   :  { %s767_s27 = smov [#allocation9]   ;;  %s686_s11 = scalar_lea.hbm %s1098_s3, 768 }
  0x37   :  { %s60_s28 = sshll.u32 %s767_s27, 4  ;;  %p687_p10 = scmp.ne.s32.totalorder %s1098_s3, %s686_s11  ;;  %s61_s28 = int_to_ptr.vmem [resolvable:$true] %s60_s28 }
  0x38   :  { %p690_p11 = scmp.lt.u32.totalorder %s686_s11, %s1098_s3 }
  0x3a   :  { %p692_p12 = pnand %p690_p11, %p687_p10 }
  0x3c   :  { %695 = shalt.err (!%p692_p12)
}
  0x3d   :  { %s696_s14 = scalar_lea.vmem %s61_s28, 768  ;;  %p701_p0 = scmp.lt.s32.totalorder %s61_s28, %s61_s28 }
  0x3e   :  { %p697_p13 = scmp.ne.s32.totalorder %s61_s28, %s696_s14  ;;  %p702_p1 = scmp.lt.s32.totalorder %s696_s14, %s696_s14 }
  0x40   :  { %p703_p2 = por %p702_p1, %p701_p0 }
  0x42   :  { %p704_p3 = pnand %p703_p2, %p697_p13 }
  0x44   :  { %707 = shalt.err (!%p704_p3)
}
  0x45   :  { %66 = dma.hbm_to_vmem [thread:$0]  %s1098_s3, 768, %s61_s28, [#allocation10], %s763_s19, %s763_s19, %s764_s20  }
  0x46   :  { %750 = dma.done.wait [#allocation3], 64  }
  0x47   :  { %751 = vsyncadd [#allocation3], 4294967232 }
  0x48   :  { %752 = dma.done.wait [#allocation7], 1536  }
  0x49   :  { %753 = vsyncadd [#allocation7], 4294965760 }
  0x4a   :  { %754 = dma.done.wait [#allocation10], 768  }
  0x4b   :  { %755 = vsyncadd [#allocation10], 4294966528  ;;  %v768_v0 = vmov 0.0|0.0   ;;  %vm769_vm0 = vmmov 0   ;;  %v770_v1 = vmov 0.0   ;;  %v882_v2 = vld [vmem:[#allocation8] sm:$0xff] }
  0x4c   :  { %542 = vmatprep.subr.bf16.mxu0 %v768_v0  ;;  %539 = vmatprep.mubr.msk.f32.mxu0 %vm769_vm0, %v770_v1  ;;  %v884_v3 = vld [vmem:[#allocation8 + $0x8] sm:$0xff]  ;;  %v109_v4 = vand.u32 2147483647, %v882_v2  ;;  %v888_v6 = vld [vmem:[#allocation8 + $0x10] sm:$0xff]  ;;  %v890_v8 = vld [vmem:[#allocation8 + $0x18] sm:$0xff]  ;;  %v103_v35 = vmax.f32 %v882_v2, 0.0 }
  0x4d   :  { %v110_v5 = vand.u32 2147483647, %v884_v3  ;;  %v111_v10 = vand.u32 2147483647, %v888_v6  ;;  %v112_v11 = vand.u32 2147483647, %v890_v8 }
  0x4e   :  { %v115_v7 = vsub.f32 0.0, %v109_v4  ;;  %v897_v13 = vld [vmem:[%s1100_s5] sm:$0x1]  ;;  %v900_v18 = vld [vmem:[#allocation8 + $0x20] sm:$0xff]  ;;  %v906_v30 = vld [vmem:[#allocation9] sm:$0xff]  ;;  %v104_v36 = vmax.f32 %v884_v3, 0.0 }
  0x4f   :  { %v116_v9 = vsub.f32 0.0, %v110_v5  ;;  %v117_v15 = vsub.f32 0.0, %v111_v10  ;;  %v118_v16 = vsub.f32 0.0, %v112_v11  ;;  %v209_v17 = vand.u32 2147483647, %v897_v13  ;;  %v902_v21 = vld [vmem:[#allocation8 + $0x28] sm:$0xff] }
  0x50   :  { %v121_v12 = vmul.f32 1.442695, %v115_v7  ;;  %v113_v23 = vand.u32 2147483647, %v900_v18  ;;  %v114_v24 = vand.u32 2147483647, %v902_v21  ;;  %v321_v32 = vmul.f32 %v906_v30, %v906_v30 }
  0x51   :  { %v123_v14 = vmul.f32 1.442695, %v116_v9  ;;  %v125_v19 = vmul.f32 1.442695, %v117_v15  ;;  %v127_v20 = vmul.f32 1.442695, %v118_v16 }
  0x52   :  { %578 = vpow2.f32 %v121_v12  ;;  %v210_v22 = vsub.f32 0.0, %v209_v17  ;;  %v119_v26 = vsub.f32 0.0, %v113_v23  ;;  %v120_v27 = vsub.f32 0.0, %v114_v24  ;;  %v908_v31 = vld [vmem:[#allocation9 + $0x8] sm:$0xff]  ;;  %v916_v37 = vld [vmem:[#allocation9 + $0x10] sm:$0xff]  ;;  %v918_v40 = vld [vmem:[#allocation9 + $0x18] sm:$0xff] }
  0x53   :  { %580 = vpow2.f32 %v123_v14  ;;  %v322_v33 = vmul.f32 %v908_v31, %v908_v31  ;;  %vm237_vm1 = vcmask 490496   ;;  %v105_v41 = vmax.f32 %v888_v6, 0.0  ;;  %v928_v49 = vld [vmem:[#allocation9 + $0x20] sm:$0xff]  ;;  %v933_v56 = vld [vmem:[#allocation9 + $0x28] sm:$0xff]  ;;  %s708_s28 = scalar_lea.hbm %s1103_s8, 16 }
  0x54   :  { %582 = vpow2.f32 %v125_v19  ;;  %v211_v25 = vmul.f32 1.442695, %v210_v22  ;;  %v129_v28 = vmul.f32 1.442695, %v119_v26  ;;  %v131_v29 = vmul.f32 1.442695, %v120_v27  ;;  %vm997_vm9 = vmpackc.low %vm237_vm1, %vm237_vm1  ;;  %p709_p4 = scmp.ne.s32.totalorder %s1103_s8, %s708_s28  ;;  %p712_p5 = scmp.lt.u32.totalorder %s708_s28, %s1103_s8 }
  0x55   :  { %584 = vpow2.f32 %v127_v20  ;;  %v106_v42 = vmax.f32 %v890_v8, 0.0  ;;  %v323_v43 = vmul.f32 %v916_v37, %v916_v37  ;;  %v208_v45 = vmax.f32 %v897_v13, 0.0  ;;  %v1005_v8 = vld [vmem:[%s1101_s6] sm:$0x1] }
  0x56   :  { %586 = vpow2.f32 %v211_v25  ;;  %v107_v46 = vmax.f32 %v900_v18, 0.0  ;;  %v324_v47 = vmul.f32 %v918_v40, %v918_v40  ;;  %v108_v50 = vmax.f32 %v902_v21, 0.0  ;;  %p714_p6 = pnand %p712_p5, %p709_p4 }
  0x57   :  { %588 = vpow2.f32 %v129_v28  ;;  %v327_v51 = vsel %vm237_vm1, %v321_v32, 0.0  ;;  %v328_v52 = vsel %vm237_vm1, %v322_v33, 0.0  ;;  %v325_v57 = vmul.f32 %v928_v49, %v928_v49 }
  0x58   :  { %590 = vpow2.f32 %v131_v29  ;;  %v939_v60 = vmul.f32 %v933_v56, %v933_v56  ;;  %v330_v61 = vsel %vm237_vm1, %v323_v43, 0.0  ;;  %v329_v4 = vadd.f32 %v328_v52, %v327_v51 }
  0x59   :  { %v332_v9 = vsel %vm237_vm1, %v324_v47, 0.0  ;;  %v944_v15 = vsel %vm237_vm1, %v325_v57, 0.0  ;;  %vm260_vm10 = vcmask 385024  }
  0x5a   :  { %v331_v25 = vadd.f32 %v330_v61, %v329_v4 }
  0x5c   :  { %v579_v34 = vpop.eup %578 }
  0x5d   :  { %v581_v38 = vpop.eup %580  ;;  %v133_v39 = vadd.f32 1.0, %v579_v34  ;;  %v136_v54 = vmul.f32 -0.5, %v579_v34  ;;  %v139_v63 = vand.u32 2147483647, %v579_v34 }
  0x5e   :  { %v142_v44 = vadd.f32 1.0, %v581_v38  ;;  %v583_v48 = vpop.eup %582  ;;  %v145_v58 = vmul.f32 -0.5, %v581_v38  ;;  %v148_v1 = vand.u32 2147483647, %v581_v38 }
  0x5f   :  { %592 = vlog2.f32 %v133_v39  ;;  %v585_v53 = vpop.eup %584  ;;  %v151_v55 = vadd.f32 1.0, %v583_v48  ;;  %v154_v5 = vmul.f32 -0.5, %v583_v48  ;;  %v137_v11 = vadd.f32 1.0, %v136_v54 }
  0x60   :  { %594 = vlog2.f32 %v142_v44  ;;  %v160_v59 = vadd.f32 1.0, %v585_v53  ;;  %v587_v62 = vpop.eup %586  ;;  %v163_v12 = vmul.f32 -0.5, %v585_v53  ;;  %v146_v17 = vadd.f32 1.0, %v145_v58 }
  0x61   :  { %596 = vlog2.f32 %v151_v55  ;;  %v213_v7 = vadd.f32 1.0, %v587_v62  ;;  %v589_v10 = vpop.eup %588  ;;  %v216_v14 = vmul.f32 -0.5, %v587_v62  ;;  %v157_v19 = vand.u32 2147483647, %v583_v48 }
  0x62   :  { %598 = vlog2.f32 %v160_v59  ;;  %v591_v16 = vpop.eup %590  ;;  %v169_v20 = vadd.f32 1.0, %v589_v10  ;;  %vm946_vm2 = vcmp.lt.f32.partialorder %v139_v63, 0.0004427343  ;;  %vm950_vm3 = vcmp.lt.f32.partialorder %v148_v1, 0.0004427343 }
  0x63   :  { %600 = vlog2.f32 %v213_v7  ;;  %v172_v24 = vmul.f32 -0.5, %v589_v10  ;;  %v155_v26 = vadd.f32 1.0, %v154_v5  ;;  %v166_v27 = vand.u32 2147483647, %v585_v53 }
  0x64   :  { %602 = vlog2.f32 %v169_v20  ;;  %v178_v28 = vadd.f32 1.0, %v591_v16  ;;  %v138_v29 = vmul.f32 %v579_v34, %v137_v11  ;;  %v164_v32 = vadd.f32 1.0, %v163_v12  ;;  %v89_v34 = vld [vmem:[#allocation6 + $0x20] sm:$0xff] }
  0x65   :  { %v217_v33 = vadd.f32 1.0, %v216_v14  ;;  %v219_v39 = vand.u32 2147483647, %v587_v62  ;;  %v147_v44 = vmul.f32 %v581_v38, %v146_v17  ;;  %vm954_vm4 = vcmp.lt.f32.partialorder %v157_v19, 0.0004427343  ;;  %v85_v17 = vld [vmem:[#allocation6] sm:$0xff] }
  0x66   :  { %604 = vlog2.f32 %v178_v28  ;;  %v181_v51 = vmul.f32 -0.5, %v591_v16  ;;  %v173_v55 = vadd.f32 1.0, %v172_v24  ;;  %v175_v57 = vand.u32 2147483647, %v589_v10  ;;  %v86_v24 = vld [vmem:[#allocation6 + $0x8] sm:$0xff] }
  0x67   :  { %v958_v58 = vadd.f32 %v332_v9, %v331_v25  ;;  %v156_v61 = vmul.f32 %v583_v48, %v155_v26  ;;  %vm960_vm5 = vcmp.lt.f32.partialorder %v166_v27, 0.0004427343  ;;  %v184_v63 = vand.u32 2147483647, %v591_v16 }
  0x68   :  { %v165_v4 = vmul.f32 %v585_v53, %v164_v32  ;;  %v218_v5 = vmul.f32 %v587_v62, %v217_v33  ;;  %vm966_vm6 = vcmp.lt.f32.partialorder %v219_v39, 0.0004427343  ;;  %v182_v14 = vadd.f32 1.0, %v181_v51  ;;  %v88_v33 = vld [vmem:[#allocation6 + $0x18] sm:$0xff] }
  0x69   :  { %v593_v43 = vpop.eup %592  ;;  %v174_v53 = vmul.f32 %v589_v10, %v173_v55  ;;  %vm976_vm7 = vcmp.lt.f32.partialorder %v175_v57, 0.0004427343  ;;  %vm983_vm8 = vcmp.lt.f32.partialorder %v184_v63, 0.0004427343 }
  0x6a   :  { %v595_v52 = vpop.eup %594  ;;  %v135_v54 = vmul.f32 0.6931472, %v593_v43 }
  0x6b   :  { %v144_v59 = vmul.f32 0.6931472, %v595_v52  ;;  %v597_v38 = vpop.eup %596 }
  0x6c   :  { %v141_v1 = vsel %vm946_vm2, %v138_v29, %v135_v54  ;;  %v599_v11 = vpop.eup %598  ;;  %v153_v12 = vmul.f32 0.6931472, %v597_v38  ;;  %v183_v29 = vmul.f32 %v591_v16, %v182_v14 }
  0x6d   :  { %v150_v9 = vsel %vm950_vm3, %v147_v44, %v144_v59  ;;  %v187_v48 = vadd.f32 %v141_v1, %v103_v35  ;;  %v162_v20 = vmul.f32 0.6931472, %v599_v11  ;;  %v601_v22 = vpop.eup %600 }
  0x6e   :  { %v188_v19 = vadd.f32 %v150_v9, %v104_v36  ;;  %v159_v2 = vsel %vm954_vm4, %v156_v61, %v153_v12  ;;  %v603_v25 = vpop.eup %602  ;;  %v215_v28 = vmul.f32 0.6931472, %v601_v22 }
  0x6f   :  { %v193_v23 = vmul.f32 %v187_v48, %v906_v30  ;;  %606 = vlog2.f32 %v187_v48  ;;  %v168_v36 = vsel %vm960_vm5, %v165_v4, %v162_v20  ;;  %v189_v10 = vadd.f32 %v159_v2, %v105_v41  ;;  %v87_v30 = vld [vmem:[#allocation6 + $0x10] sm:$0xff] }
  0x70   :  { %v194_v3 = vmul.f32 %v188_v19, %v908_v31  ;;  %608 = vlog2.f32 %v188_v19  ;;  %v190_v27 = vadd.f32 %v168_v36, %v106_v42  ;;  %v171_v31 = vmul.f32 0.6931472, %v603_v25  ;;  %v605_v43 = vpop.eup %604 }
  0x71   :  { %v199_v26 = vadd.f32 %v193_v23, %v85_v17  ;;  %v195_v39 = vmul.f32 %v189_v10, %v916_v37  ;;  %610 = vlog2.f32 %v189_v10  ;;  %v221_v37 = vsel %vm966_vm6, %v218_v5, %v215_v28 }
  0x72   :  { %v200_v32 = vadd.f32 %v194_v3, %v86_v24  ;;  %v196_v41 = vmul.f32 %v190_v27, %v918_v40  ;;  %612 = vlog2.f32 %v190_v27  ;;  %v222_v51 = vadd.f32 %v221_v37, %v208_v45  ;;  %v205_v40 = vld [vmem:[%s1099_s4] sm:$0x1] }
  0x73   :  { %v506_v44 = vadd.f32 -2.0, %v199_v26  ;;  %v201_v47 = vadd.f32 %v195_v39, %v87_v30  ;;  %v177_v55 = vsel %vm976_vm7, %v174_v53, %v171_v31  ;;  %v180_v57 = vmul.f32 0.6931472, %v605_v43 }
  0x74   :  { %v507_v42 = vadd.f32 -2.0, %v200_v32  ;;  %v543_v16 = vpack.c.bf16 %v200_v32, %v199_v26  ;;  %v202_v54 = vadd.f32 %v196_v41, %v88_v33  ;;  %v223_v61 = vmul.f32 %v222_v51, %v1005_v8 }
  0x75   :  { %v231_v52 = vmul.f32 %v506_v44, %v506_v44  ;;  %614 = vlog2.f32 %v222_v51  ;;  %v191_v13 = vadd.f32 %v177_v55, %v107_v46  ;;  %v186_v63 = vsel %vm983_vm8, %v183_v29, %v180_v57  ;;  %v90_v46 = vld [vmem:[#allocation6 + $0x28] sm:$0xff] }
  0x76   :  { %v232_v59 = vmul.f32 %v507_v42, %v507_v42  ;;  %545 = vmatpush3.bf16.xpose.msk.msra.mxu0 %vm997_vm9, %v543_v16  ;;  %v547_v45 = vpack.c.bf16 %v202_v54, %v201_v47  ;;  %v508_v38 = vadd.f32 -2.0, %v201_v47  ;;  %v509_v1 = vadd.f32 -2.0, %v202_v54 }
  0x77   :  { %546 = vmatprep.subr.bf16.mxu0 %v768_v0  ;;  %v1024_v4 = vadd.f32 %v223_v61, %v205_v40  ;;  %v192_v5 = vadd.f32 %v186_v63, %v108_v50  ;;  %v197_v7 = vmul.f32 %v191_v13, %v928_v49  ;;  %v238_v11 = vsel %vm237_vm1, %v231_v52, 0.0 }
  0x78   :  { %v233_v9 = vmul.f32 %v508_v38, %v508_v38  ;;  %v234_v48 = vmul.f32 %v509_v1, %v509_v1  ;;  %v239_v12 = vsel %vm237_vm1, %v232_v59, 0.0  ;;  %616 = vlog2.f32 %v191_v13 }
  0x79   :  { %v607_v18 = vpop.eup %606  ;;  %v512_v17 = vadd.f32 -2.0, %v1024_v4  ;;  %v198_v19 = vmul.f32 %v192_v5, %v933_v56  ;;  %v203_v20 = vadd.f32 %v197_v7, %v89_v34  ;;  %v240_v53 = vadd.f32 %v239_v12, %v238_v11 }
  0x7a   :  { %v609_v14 = vpop.eup %608  ;;  %v241_v21 = vsel %vm237_vm1, %v233_v9, 0.0  ;;  %v243_v49 = vsel %vm237_vm1, %v234_v48, 0.0  ;;  %v277_v50 = vmul.f32 0.6931472, %v607_v18  ;;  %618 = vlog2.f32 %v192_v5 }
  0x7b   :  { %v279_v62 = vmul.f32 0.6931472, %v609_v14  ;;  %v611_v22 = vpop.eup %610  ;;  %v259_v24 = vmul.f32 %v512_v17, %v512_v17  ;;  %v204_v23 = vadd.f32 %v198_v19, %v90_v46  ;;  %v510_v2 = vadd.f32 -2.0, %v203_v20 }
  0x7c   :  { %v242_v35 = vadd.f32 %v241_v21, %v240_v53  ;;  %v613_v3 = vpop.eup %612  ;;  %v281_v36 = vmul.f32 0.6931472, %v611_v22  ;;  %v288_v10 = vsel %vm237_vm1, %v277_v50, 0.0  ;;  %v335_v43 = vadd.f32 %v944_v15, %v958_v58 }
  0x7d   :  { %v289_v56 = vsel %vm237_vm1, %v279_v62, 0.0  ;;  %v261_v25 = vsel %vm260_vm10, %v259_v24, 0.0  ;;  %v511_v26 = vadd.f32 -2.0, %v204_v23  ;;  %v235_v30 = vmul.f32 %v510_v2, %v510_v2 }
  0x7e   :  { %549 = vmatpush3.bf16.xpose.msk.msra.mxu0 %vm997_vm9, %v547_v45  ;;  %v244_v27 = vadd.f32 %v243_v49, %v242_v35  ;;  %262 = vadd.xlane.f32.xlu0 %v261_v25  ;;  %v283_v28 = vmul.f32 0.6931472, %v613_v3  ;;  %v290_v29 = vadd.f32 %v289_v56, %v288_v10  ;;  %v291_v32 = vsel %vm237_vm1, %v281_v36, 0.0  ;;  %v364_v45 = vld [vmem:[#allocation2] sm:$0xf] }
  0x7f   :  { %550 = vmatprep.subr.bf16.mxu0 %v768_v0  ;;  %v615_v33 = vpop.eup %614  ;;  %v236_v39 = vmul.f32 %v511_v26, %v511_v26  ;;  %v245_v31 = vsel %vm237_vm1, %v235_v30, 0.0  ;;  %v551_v47 = vpack.c.bf16 %v204_v23, %v203_v20  ;;  %v336_v0 = vsel %vm237_vm1, %v939_v60, 0.0 }
  0x80   :  { %v309_v44 = vmul.f32 0.6931472, %v615_v33  ;;  %v246_v41 = vadd.f32 %v245_v31, %v244_v27  ;;  %v292_v37 = vadd.f32 %v291_v32, %v290_v29  ;;  %v293_v42 = vsel %vm237_vm1, %v283_v28, 0.0 }
  0x81   :  { %v247_v16 = vsel %vm237_vm1, %v236_v39, 0.0  ;;  %v337_v15 = vadd.f32 %v336_v0, %v335_v43  ;;  %v347_v13 = vmul.f32 %v1005_v8, %v1005_v8 }
  0x82   :  { %v617_v51 = vpop.eup %616  ;;  %v310_v52 = vsel %vm260_vm10, %v309_v44, 0.0  ;;  %v248_v54 = vadd.f32 %v247_v16, %v246_v41  ;;  %v294_v40 = vadd.f32 %v293_v42, %v292_v37  ;;  %v366_v41 = vlaneseq }
  0x83   :  { %311 = vadd.xlane.f32.xlu1 %v310_v52  ;;  %v285_v55 = vmul.f32 0.6931472, %v617_v51  ;;  %v348_v63 = vsel %vm260_vm10, %v347_v13, 0.0 }
  0x84   :  { %249 = vadd.xlane.f32.xlu0 %v248_v54  ;;  %v619_v57 = vpop.eup %618  ;;  %v367_v37 = vshrl.u32 %v366_v41, 7 }
  0x85   :  { %v295_v58 = vsel %vm237_vm1, %v285_v55, 0.0  ;;  %v287_v61 = vmul.f32 0.6931472, %v619_v57 }
  0x86   :  { %553 = vmatpush3.bf16.xpose.msk.msra.mxu0 %vm997_vm9, %v551_v47  ;;  %v296_v59 = vadd.f32 %v295_v58, %v294_v40  ;;  %v368_v42 = vsub.s32 0, %v367_v37 }
  0x87   :  { %v297_v60 = vsel %vm237_vm1, %v287_v61, 0.0 }
  0x88   :  { %338 = vadd.xlane.f32.xlu0 %v337_v15  ;;  %v298_v34 = vadd.f32 %v297_v60, %v296_v59 }
  0x8a   :  { %299 = vadd.xlane.f32.xlu1 %v298_v34 }
  0x8d   :  { %540 = vmatmul.mubr.msk.f32.vlgmr.msra.gmra.mrb[0].mxu0 %vm237_vm1, %v364_v45 }
  0x8e   :  { %349 = vadd.xlane.f32.xlu1 %v348_v63 }
 0x10b   :  { %v263_v6 = vpop.xlane.xlu0 %262 }
 0x10c   :  { %v264_v38 = vrot.slane %v263_v6, 4 }
 0x10e   :  { %v265_v1 = vadd.f32 %v264_v38, %v263_v6 }
 0x110   :  { %v266_v5 = vrot.slane %v265_v1, 2  ;;  %v312_v7 = vpop.xlane.xlu1 %311 }
 0x111   :  { %v313_v11 = vrot.slane %v312_v7, 4  ;;  %v250_v18 = vpop.xlane.xlu0 %249 }
 0x112   :  { %v251_v46 = vrot.slane %v250_v18, 4  ;;  %v267_v9 = vadd.f32 %v266_v5, %v265_v1 }
 0x113   :  { %v314_v12 = vadd.f32 %v313_v11, %v312_v7 }
 0x114   :  { %v252_v48 = vadd.f32 %v251_v46, %v250_v18  ;;  %v268_v19 = vrot.slane %v267_v9, 1 }
 0x115   :  { %v339_v8 = vpop.xlane.xlu0 %338  ;;  %v315_v21 = vrot.slane %v314_v12, 2 }
 0x116   :  { %v253_v14 = vrot.slane %v252_v48, 2  ;;  %v340_v17 = vrot.slane %v339_v8, 4  ;;  %v269_v24 = vadd.f32 %v268_v19, %v267_v9 }
 0x117   :  { %v300_v49 = vpop.xlane.xlu1 %299  ;;  %v316_v36 = vadd.f32 %v315_v21, %v314_v12 }
 0x118   :  { %v341_v20 = vadd.f32 %v340_v17, %v339_v8  ;;  %v254_v53 = vadd.f32 %v253_v14, %v252_v48  ;;  %v301_v50 = vrot.slane %v300_v49, 4 }
 0x119   :  { %v317_v27 = vrot.slane %v316_v36, 1 }
 0x11a   :  { %v342_v62 = vrot.slane %v341_v20, 2  ;;  %v255_v22 = vrot.slane %v254_v53, 1  ;;  %v302_v23 = vadd.f32 %v301_v50, %v300_v49 }
 0x11b   :  { %v350_v3 = vpop.xlane.xlu1 %349  ;;  %v318_v31 = vadd.f32 %v317_v27, %v316_v36 }
 0x11c   :  { %v343_v2 = vadd.f32 %v342_v62, %v341_v20  ;;  %v256_v35 = vadd.f32 %v255_v22, %v254_v53  ;;  %v303_v10 = vrot.slane %v302_v23, 2  ;;  %v351_v56 = vrot.slane %v350_v3, 4 }
 0x11e   :  { %554 = vpush %v256_v35  ;;  %v352_v25 = vadd.f32 %v351_v56, %v350_v3  ;;  %v304_v26 = vadd.f32 %v303_v10, %v302_v23  ;;  %v344_v30 = vrot.slane %v343_v2, 1 }
 0x11f   :  { %556 = vpush %v269_v24 }
 0x120   :  { %v353_v28 = vrot.slane %v352_v25, 2  ;;  %v305_v29 = vrot.slane %v304_v26, 1  ;;  %v345_v39 = vadd.f32 %v344_v30, %v343_v2 }
 0x122   :  { %v354_v32 = vadd.f32 %v353_v28, %v352_v25  ;;  %v306_v33 = vadd.f32 %v305_v29, %v304_v26 }
 0x124   :  { %558 = vpush %v306_v33  ;;  %v355_v43 = vrot.slane %v354_v32, 1 }
 0x125   :  { %560 = vpush %v318_v31 }
 0x126   :  { %562 = vpush %v345_v39  ;;  %v356_v44 = vadd.f32 %v355_v43, %v354_v32 }
 0x128   :  { %564 = vpush %v356_v44 }
 0x14f   :  { %s555_s4 = spop %554 }
 0x150   :  { %s557_s6 = spop %556 }
 0x151   :  { %s271_s17 = sadd.f32 %s557_s6, %s555_s4 }
 0x153   :  { %s272_s18 = smul.f32 0.5, %s271_s17 }
 0x155   :  { %s273_s21 = ssub.f32 -2690.652, %s272_s18  ;;  %s559_s22 = spop %558 }
 0x156   :  { %s561_s23 = spop %560 }
 0x157   :  { %275 = sst [smem:[#allocation12]] %s273_s21  ;;  %s563_s0 = spop %562 }
 0x158   :  { %s320_s25 = sadd.f32 %s561_s23, %s559_s22 }
 0x159   :  { %717 = shalt.err (!%p714_p6)
}
 0x15a   :  { %s771_s13 = smov [#allocation12]   ;;  %s565_s14 = spop %564  ;;  %v369_v16 = vrot.slane %v1024_v4, %v368_v42  ;;  %vm462_vm11 = vcmask 388096  }
 0x15b   :  { %481 = dma.smem_to_hbm %s771_s13, 16, %s1103_s8, [#allocation5]  }
 0x15c   :  { %s358_s2 = sadd.f32 %s565_s14, %s563_s0  ;;  %s772_s26 = smov [#allocation11]  }
 0x15d   :  { %s470_s3 = sshll.u32 %s772_s26, 4  ;;  %s359_s19 = ssub.f32 -2690.652, %s320_s25  ;;  %s471_s3 = int_to_ptr.vmem [resolvable:$true] %s470_s3 }
 0x15e   :  { %s360_s5 = smul.f32 0.5, %s358_s2  ;;  %s718_s15 = scalar_lea.vmem %s471_s3, 64 }
 0x15f   :  { %p719_p7 = scmp.ne.s32.totalorder %s471_s3, %s718_s15  ;;  %p723_p8 = scmp.lt.s32.totalorder %s471_s3, %s471_s3 }
 0x160   :  { %v458_v47 = vpop.f32.mrb[0].mxu0  ;;  %s361_s20 = ssub.f32 %s359_s19, %s360_s5  ;;  %p724_p9 = scmp.lt.s32.totalorder %s718_s15, %s718_s15 }
 0x161   :  { %v459_v0 = vadd.f32 %v458_v47, %v369_v16  ;;  %v541_v51 = vpop.f32.mrb[1].mxu0 }
 0x162   :  { %363 = sst [smem:[#allocation13]] %s361_s20  ;;  %p725_p10 = por %p724_p9, %p723_p8 }
 0x163   :  { %463 = vst.msk [vmem:[#allocation11] sm:$0xf] %vm462_vm11, %v459_v0 }
 0x164   :  { %p726_p11 = pnand %p725_p10, %p719_p7 }
 0x166   :  { %729 = shalt.err (!%p726_p11)
}
 0x167   :  { %s730_s4 = scalar_lea.hbm %s1102_s7, 64 }
 0x168   :  { %p731_p12 = scmp.ne.s32.totalorder %s1102_s7, %s730_s4  ;;  %p734_p13 = scmp.lt.u32.totalorder %s730_s4, %s1102_s7 }
 0x16a   :  { %p736_p0 = pnand %p734_p13, %p731_p12 }
 0x16c   :  { %739 = shalt.err (!%p736_p0)
}
 0x16d   :  { %473 = dma.vmem_to_hbm [thread:$0]  %s471_s3, 64, %s1102_s7, [#allocation4]  }
 0x16e   :  { %s740_s24 = scalar_lea.hbm %s1104_s9, 16 }
 0x16f   :  { %p741_p1 = scmp.ne.s32.totalorder %s1104_s9, %s740_s24  ;;  %p744_p2 = scmp.lt.u32.totalorder %s740_s24, %s1104_s9 }
 0x171   :  { %p746_p3 = pnand %p744_p2, %p741_p1 }
 0x173   :  { %749 = shalt.err (!%p746_p3)
}
 0x174   :  { %s773_s11 = smov [#allocation13]  }
 0x175   :  { %489 = dma.smem_to_hbm %s773_s11, 16, %s1104_s9, [#allocation14]  }
 0x176   :  { %756 = dma.done.wait [#allocation4], 64  }
 0x177   :  { %757 = vsyncadd [#allocation4], 4294967232 }
 0x178   :  { %758 = dma.done.wait [#allocation5], 16  }
 0x179   :  { %759 = vsyncadd [#allocation5], 4294967280 }
 0x17a   :  { %760 = dma.done.wait [#allocation14], 16  }
 0x17b   :  { %761 = vsyncadd [#allocation14], 4294967280 }
 0x17c   :  { %499 = sfence }
 0x17d   :  { %500 = vsyncpa [#allocation3], 1 }
 0x17e   :  { %501 = vsyncpa [#allocation7], 1 }
 0x17f   :  { %502 = vsyncpa [#allocation10], 1 }
 0x180   :  { %503 = vsyncpa [#allocation4], 1 }
 0x181   :  { %504 = vsyncpa [#allocation5], 1 }
 0x182   :  { %505 = vsyncpa [#allocation14], 1 }

</bundles_post_ra>
